<compile_context>
chip_gen: v6e
topology: v6e:2x2x1
jax: 0.10.0
libtpu: 0.0.40
codegen_flags: <defaults>
</compile_context>

<pallas_src>
import jax
import jax.numpy as jnp
from jax.experimental import pallas as pl
from jax.experimental.pallas import tpu as pltpu

EPS = 1e-40  # PyTorch disjunction() epsilon (kept only in the plain-JAX reference)


def _xui_kernel(a_ref, s_ref, out_ref):
    """One row tile of the (B, B) disjunction map.

    a_ref : (rt, 1)    sigmoid(weight[users]) for this row tile
    s_ref : (1, npad)  per-row dot products <gu, gamma_i>, lane-padded with 0
    out   : (rt, npad) xui rows for this tile
    """
    a = a_ref[...]                    # (rt, 1)
    s = s_ref[...]                    # (1, npad)
    s1 = a * s                        # a[i] * s[j]
    s2 = (a - 1.0) * s                # (1 - a[i]) * (-s[j]), negation folded
    # log(1 - sigmoid(x)) == -softplus(x); the two softplus terms share one log.
    e1 = jnp.exp(-jnp.abs(s1))
    e2 = jnp.exp(-jnp.abs(s2))
    sp_sum = (jnp.maximum(s1, 0.0) + jnp.maximum(s2, 0.0)
              + jnp.log((1.0 + e1) * (1.0 + e2)))
    # xui = 1 + 1/(log_sum - 1) with log_sum = -sp_sum  ==  1 - 1/(sp_sum + 1)
    out_ref[...] = 1.0 - pl.reciprocal(sp_sum + 1.0, approx=False)


def rbrs_forward(Gu, Gi, weight, users, items):
    """Pallas-backed equivalent of RBRSOPPOSITEModel.forward((users, items))."""
    B = users.shape[0]

    users_i = users.astype(jnp.int32)
    items_i = items.astype(jnp.int32)

    # Gathers & O(B*K) per-row ops stay in XLA: gu / gamma_i must be written to
    # HBM anyway (module outputs), and a / s are tiny.
    gu = Gu[users_i]                                      # (B, K)
    gamma_i = Gi[items_i]                                 # (B, K)
    a_col = jax.nn.sigmoid(weight[users_i])               # (B, 1)
    s = jnp.sum(gu * gamma_i, axis=-1)                    # (B,)

    npad = max(128, ((B + 127) // 128) * 128)             # lane-dense padded width
    s_row = jnp.pad(s, (0, npad - B)).reshape(1, npad)    # zeros in padded lanes

    # Row tile: keep each (row_tile, npad) f32 block <= ~4 MiB so the
    # double-buffered output fits comfortably in v7x scoped VMEM; multiple of 8.
    rt = max(8, min(512, (4 * 1024 * 1024) // (npad * 4)))
    rt = (rt // 8) * 8
    row_tile = min(B, rt)
    grid = (pl.cdiv(B, row_tile),)

    cost = pl.CostEstimate(
        flops=10 * B * npad,
        transcendentals=3 * B * npad,
        bytes_accessed=4 * (B * npad + B + npad),
    )

    xui_pad = pl.pallas_call(
        _xui_kernel,
        grid=grid,
        in_specs=[
            pl.BlockSpec((row_tile, 1), lambda i: (i, 0)),   # a, per row tile
            pl.BlockSpec((1, npad), lambda i: (0, 0)),       # s, whole padded row
        ],
        out_specs=pl.BlockSpec((row_tile, npad), lambda i: (i, 0)),
        out_shape=jax.ShapeDtypeStruct((B, npad), jnp.float32),
        compiler_params=pltpu.CompilerParams(
            dimension_semantics=("parallel",)),
        cost_estimate=cost,
    )(a_col, s_row)

    xui = xui_pad if npad == B else xui_pad[:, :B]
    return xui, gu, gamma_i


def _reference_forward(Gu, Gi, weight, users, items):
    """Plain-JAX mirror of the PyTorch forward (broadcast semantics included)."""
    gu = Gu[users]
    gamma_i = Gi[items]
    a = jax.nn.sigmoid(weight[users])                 # (B, 1)
    b = 1.0 - a
    s1 = a * jnp.sum(gu * gamma_i, -1)                # (B, B) via broadcast
    s2 = b * jnp.sum((-gu) * gamma_i, -1)             # (B, B)
    t = jax.nn.sigmoid(jnp.stack([s1, s2], axis=1))   # (B, 2, B)
    log_sum = jnp.sum(jnp.log(1.0 - t + EPS), axis=1)
    return 1.0 - (-1.0 / (-1.0 + log_sum)), gu, gamma_i


def _xavier_uniform(key, shape):
    fan_out, fan_in = shape
    bound = (6.0 / (fan_in + fan_out)) ** 0.5
    return jax.random.uniform(key, shape, jnp.float32, -bound, bound)


if __name__ == "__main__":
    num_users, num_items, embed_k, batch = 32, 40, 32, 8

    key = jax.random.PRNGKey(0)
    k_gu, k_gi, k_w, k_u, k_i = jax.random.split(key, 5)

    Gu = _xavier_uniform(k_gu, (num_users, embed_k))              # Embedding(num_users, K)
    Gi = _xavier_uniform(k_gi, (num_items, embed_k))              # Embedding(num_items, K)
    weight = jax.random.normal(k_w, (num_users, 1), jnp.float32)  # nn.Parameter N(0,1)

    users = jax.random.randint(k_u, (batch,), 0, num_users)
    items = jax.random.randint(k_i, (batch,), 0, num_items)

    xui, gu, gamma_i = rbrs_forward(Gu, Gi, weight, users, items)
    jax.block_until_ready(xui)

    xui_ref, gu_ref, gi_ref = _reference_forward(Gu, Gi, weight, users, items)
    assert xui.shape == (batch, batch)
    assert jnp.allclose(xui, xui_ref, atol=1e-5, rtol=1e-5)
    assert jnp.allclose(gu, gu_ref) and jnp.allclose(gamma_i, gi_ref)

    print("KERNEL_OK")
</pallas_src>

<mosaic_0001>
module attributes {stable_mosaic.version = 11 : i64} {
  func.func @_xui_kernel(%arg0: i32, %arg1: memref<8x1xf32, #tpu.memory_space<vmem>>, %arg2: memref<1x128xf32, #tpu.memory_space<vmem>>, %arg3: memref<8x128xf32, #tpu.memory_space<vmem>>) attributes {dimension_semantics = [#tpu.dimension_semantics<parallel>], iteration_bounds = array<i64: 1>, scalar_prefetch = 0 : i64, scratch_operands = 0 : i64, tpu.core_type = #tpu.core_type<tc>, window_params = [{transform_indices = @transform_0, window_bounds = array<i64: 8, 1>}, {pipeline_mode = #tpu.pipeline_mode<synchronous>, transform_indices = @transform_1, window_bounds = array<i64: 1, 128>}, {transform_indices = @transform_2, window_bounds = array<i64: 8, 128>}]} {
    %c0 = arith.constant 0 : index
    %c0_0 = arith.constant 0 : index
    %0 = vector.load %arg1[%c0, %c0_0] : memref<8x1xf32, #tpu.memory_space<vmem>>, vector<8x1xf32>
    %c0_1 = arith.constant 0 : index
    %c0_2 = arith.constant 0 : index
    %1 = vector.load %arg2[%c0_1, %c0_2] : memref<1x128xf32, #tpu.memory_space<vmem>>, vector<1x128xf32>
    %2 = vector.broadcast %0 : vector<8x1xf32> to vector<8x128xf32>
    %3 = vector.broadcast %1 : vector<1x128xf32> to vector<8x128xf32>
    %4 = arith.mulf %2, %3 : vector<8x128xf32>
    %cst = arith.constant 1.000000e+00 : f32
    %5 = vector.broadcast %cst : f32 to vector<8x1xf32>
    %6 = arith.subf %0, %5 : vector<8x1xf32>
    %7 = vector.broadcast %6 : vector<8x1xf32> to vector<8x128xf32>
    %8 = vector.broadcast %1 : vector<1x128xf32> to vector<8x128xf32>
    %9 = arith.mulf %7, %8 : vector<8x128xf32>
    %10 = math.absf %4 : vector<8x128xf32>
    %cst_3 = arith.constant 0.000000e+00 : f32
    %11 = vector.broadcast %cst_3 : f32 to vector<8x128xf32>
    %12 = arith.subf %11, %10 : vector<8x128xf32>
    %13 = math.exp %12 : vector<8x128xf32>
    %14 = math.absf %9 : vector<8x128xf32>
    %cst_4 = arith.constant 0.000000e+00 : f32
    %15 = vector.broadcast %cst_4 : f32 to vector<8x128xf32>
    %16 = arith.subf %15, %14 : vector<8x128xf32>
    %17 = math.exp %16 : vector<8x128xf32>
    %cst_5 = arith.constant 0.000000e+00 : f32
    %18 = vector.broadcast %cst_5 : f32 to vector<8x128xf32>
    %19 = arith.maximumf %4, %18 : vector<8x128xf32>
    %cst_6 = arith.constant 0.000000e+00 : f32
    %20 = vector.broadcast %cst_6 : f32 to vector<8x128xf32>
    %21 = arith.maximumf %9, %20 : vector<8x128xf32>
    %22 = arith.addf %19, %21 : vector<8x128xf32>
    %cst_7 = arith.constant 1.000000e+00 : f32
    %23 = vector.broadcast %cst_7 : f32 to vector<8x128xf32>
    %24 = arith.addf %23, %13 : vector<8x128xf32>
    %cst_8 = arith.constant 1.000000e+00 : f32
    %25 = vector.broadcast %cst_8 : f32 to vector<8x128xf32>
    %26 = arith.addf %25, %17 : vector<8x128xf32>
    %27 = arith.mulf %24, %26 : vector<8x128xf32>
    %28 = math.log %27 : vector<8x128xf32>
    %29 = arith.addf %22, %28 : vector<8x128xf32>
    %cst_9 = arith.constant 1.000000e+00 : f32
    %30 = vector.broadcast %cst_9 : f32 to vector<8x128xf32>
    %31 = arith.addf %29, %30 : vector<8x128xf32>
    %32 = tpu.reciprocal %31 : vector<8x128xf32> -> vector<8x128xf32>
    %cst_10 = arith.constant 1.000000e+00 : f32
    %33 = vector.broadcast %cst_10 : f32 to vector<8x128xf32>
    %34 = arith.subf %33, %32 : vector<8x128xf32>
    %c0_11 = arith.constant 0 : index
    %c0_12 = arith.constant 0 : index
    %35 = vector.load %arg3[%c0_11, %c0_12] : memref<8x128xf32, #tpu.memory_space<vmem>>, vector<8x128xf32>
    tpu.vector_store %arg3[%c0_11, %c0_12], %34 {strides = array<i32>} : memref<8x128xf32, #tpu.memory_space<vmem>>, vector<8x128xf32>,
    return
  }
  func.func @transform_0(%arg0: i32) -> (i32, i32) {
    %c0_i32 = arith.constant 0 : i32
    %c0_i32_0 = arith.constant 0 : i32
    return %arg0, %c0_i32 : i32, i32
  }
  func.func @transform_1(%arg0: i32) -> (i32, i32) {
    %c0_i32 = arith.constant 0 : i32
    %c0_i32_0 = arith.constant 0 : i32
    %c0_i32_1 = arith.constant 0 : i32
    return %c0_i32, %c0_i32_0 : i32, i32
  }
  func.func @transform_2(%arg0: i32) -> (i32, i32) {
    %c0_i32 = arith.constant 0 : i32
    %c0_i32_0 = arith.constant 0 : i32
    return %arg0, %c0_i32 : i32, i32
  }
}

</mosaic_0001>

<bundles_post_ra>
// kernel: tpu_custom_call.1
= control target key start
LH: loop header
LB: loop body
LE: loop exit
PB: predicated region body
PF: predicated region fallthrough
CT: control target
= control target key end

     0   :  { %s129_s0 = inlined_call_operand.vmem [shape: f32[8,1], index: 0, kind: input, shape index: {}]   ;;  %s130_s1 = inlined_call_operand.vmem [shape: f32[1,128], index: 1, kind: input, shape index: {}]   ;;  %s131_s2 = inlined_call_operand.hbm [shape: f32[8,128], index: 2, kind: output, shape index: {}]  }
   0x1   :  { %v12_v0 = vld [vmem:[%s129_s0] sm:$0xff] }
   0x2   :  { %7 = vsyncpa [#allocation3], 0  ;;  %v103_v1 = vmov 0   ;;  %v69_v2 = vadd.f32 -1.0, %v12_v0  ;;  %v68_v3 = vld [vmem:[%s130_s1] ss:$0 sm:$0xff] }
   0x3   :  { %72 = vset.pattern.permute.xlu0 %v103_v1  ;;  %s104_s0 = smov [#allocation2]  }
   0x4   :  { %16 = vperm.xlu0 %72, %v12_v0   ;;  %s60_s1 = sshll.u32 %s104_s0, 4  ;;  %s61_s1 = int_to_ptr.vmem [resolvable:$true] %s60_s1 }
   0x5   :  { %s81_s13 = scalar_lea.vmem %s61_s1, 128  ;;  %p86_p1 = scmp.lt.s32.totalorder %s61_s1, %s61_s1 }
   0x6   :  { %p82_p0 = scmp.ne.s32.totalorder %s61_s1, %s81_s13  ;;  %p87_p2 = scmp.lt.s32.totalorder %s81_s13, %s81_s13 }
   0x8   :  { %29 = vperm.xlu0 %72, %v69_v2   ;;  %p88_p3 = por %p87_p2, %p86_p1 }
   0xa   :  { %p89_p4 = pnand %p88_p3, %p82_p0 }
  0x7f   :  { %v17_v4 = vpop.permute.xlu0 %16 }
  0x80   :  { %v25_v5 = vmul.f32 %v68_v3, %v17_v4 }
  0x82   :  { %v33_v6 = vand.u32 2147483647, %v25_v5  ;;  %v41_v20 = vmax.f32 %v25_v5, 0.0 }
  0x83   :  { %v30_v7 = vpop.permute.xlu0 %29 }
  0x84   :  { %v34_v8 = vsub.f32 0.0, %v33_v6  ;;  %v32_v9 = vmul.f32 %v68_v3, %v30_v7 }
  0x86   :  { %v35_v10 = vmul.f32 1.442695, %v34_v8  ;;  %v37_v11 = vand.u32 2147483647, %v32_v9  ;;  %v42_v19 = vmax.f32 %v32_v9, 0.0 }
  0x88   :  { %v38_v12 = vsub.f32 0.0, %v37_v11  ;;  %73 = vpow2.f32 %v35_v10  ;;  %v43_v22 = vadd.f32 %v42_v19, %v41_v20 }
  0x8a   :  { %v39_v13 = vmul.f32 1.442695, %v38_v12 }
  0x8c   :  { %75 = vpow2.f32 %v39_v13 }
  0x95   :  { %v74_v14 = vpop.eup %73 }
  0x96   :  { %v44_v16 = vadd.f32 1.0, %v74_v14 }
  0x99   :  { %v76_v15 = vpop.eup %75 }
  0x9a   :  { %v45_v17 = vadd.f32 1.0, %v76_v15 }
  0x9c   :  { %v46_v18 = vmul.f32 %v45_v17, %v44_v16 }
  0x9e   :  { %77 = vlog2.f32 %v46_v18 }
  0xab   :  { %v78_v21 = vpop.eup %77 }
  0xac   :  { %v48_v23 = vmul.f32 0.6931472, %v78_v21 }
  0xae   :  { %v49_v24 = vadd.f32 %v48_v23, %v43_v22 }
  0xb0   :  { %v50_v25 = vadd.f32 1.0, %v49_v24 }
  0xb2   :  { %79 = vrcp.f32 %v50_v25 }
  0xbf   :  { %v80_v26 = vpop.eup %79 }
  0xc0   :  { %v52_v27 = vsub.f32 1.0, %v80_v26 }
  0xc2   :  { %53 = vst [vmem:[#allocation2] sm:$0xff] %v52_v27 }
  0xc3   :  { %92 = shalt.err (!%p89_p4)
}
  0xc4   :  { %63 = dma.vmem_to_hbm [thread:$0]  %s61_s1, 128, %s131_s2, [#allocation3]  }
  0xc5   :  { %101 = dma.done.wait [#allocation3], 128  }
  0xc6   :  { %102 = vsyncadd [#allocation3], 4294967168 }
  0xc7   :  { %67 = vsyncpa [#allocation3], 1 }

</bundles_post_ra>
